<compile_context>
chip_gen: v6e
topology: v6e:2x2x1
jax: 0.10.0
libtpu: 0.0.40
codegen_flags: <defaults>
</compile_context>

<pallas_src>
import functools

import jax
import jax.numpy as jnp
from jax.experimental import pallas as pl
from jax.experimental.pallas import tpu as pltpu


def _rmsnorm_kernel(x_ref, w_ref, o_ref, *, eps, dim):
    # x_ref: (tile_rows, dim_p), w_ref: (1, dim_p), o_ref: (tile_rows, dim_p)
    x = x_ref[...]
    xf = x.astype(jnp.float32)
    # Sum over the (possibly zero-padded) feature axis, divide by the TRUE dim.
    ms = jnp.sum(xf * xf, axis=-1, keepdims=True) * (1.0 / dim)
    inv = jax.lax.rsqrt(ms + eps)                 # EUP rsqrt
    normed = (xf * inv).astype(x.dtype)           # matches torch `.type_as(x)`
    out = normed.astype(jnp.float32) * w_ref[...].astype(jnp.float32)
    o_ref[...] = out.astype(o_ref.dtype)


def _sublane_multiple(itemsize):
    return {4: 8, 2: 16, 1: 32}.get(itemsize, 8)


def rms_norm(x, weight, eps=1e-6, *, tile_rows=None,
             target_block_bytes=4 * 1024 * 1024):
    """RMSNorm over the last axis of x, scaled by `weight` (shape (dim,))."""
    orig_shape = x.shape
    dim = orig_shape[-1]
    out_dtype = x.dtype

    x2d = x.reshape(-1, dim)
    rows = x2d.shape[0]

    # Keep the feature (lane) axis dense: pad to a multiple of 128 lanes if
    # needed.  Real LLM hidden sizes (1024/4096/...) take the no-copy path.
    dim_p = ((dim + 127) // 128) * 128
    w2d = weight.reshape(1, dim)
    if dim_p != dim:
        x2d = jnp.pad(x2d, ((0, 0), (0, dim_p - dim)))
        w2d = jnp.pad(w2d, ((0, 0), (0, dim_p - dim)))

    itemsize = jnp.dtype(x2d.dtype).itemsize
    sub = _sublane_multiple(itemsize)

    if tile_rows is None:
        # Size the row tile so one input block is ~target_block_bytes, rounded
        # to the sublane packing for this dtype.  Capped for megacore-sharding
        # headroom and so the footprint fits v7x's 64 MiB VMEM comfortably.
        row_bytes = dim_p * itemsize
        tile_rows = max(sub, (target_block_bytes // row_bytes) // sub * sub)
        tile_rows = min(tile_rows, 1024)
    else:
        tile_rows = max(sub, ((tile_rows + sub - 1) // sub) * sub)

    if tile_rows >= rows:
        # Single block covering all rows (block == full array dim: always legal).
        tile_rows = rows
    grid = pl.cdiv(rows, tile_rows)  # ragged trailing block is masked by Pallas

    # Raise the scoped-VMEM limit to cover double-buffered in/out blocks plus
    # f32 temporaries; clamp to 48 MiB so it is safe on every generation
    # (v5e/v6e: 128 MiB physical, v7x: 64 MiB physical per TensorCore).
    blk_in = tile_rows * dim_p * itemsize
    blk_out = tile_rows * dim_p * jnp.dtype(out_dtype).itemsize
    blk_f32 = tile_rows * dim_p * 4
    est = 2 * blk_in + 2 * blk_out + 2 * blk_f32
    vmem_limit = int(min(max(est * 3 // 2, 32 * 1024 * 1024), 48 * 1024 * 1024))

    kernel = functools.partial(_rmsnorm_kernel, eps=eps, dim=dim)
    out2d = pl.pallas_call(
        kernel,
        out_shape=jax.ShapeDtypeStruct((rows, dim_p), out_dtype),
        grid_spec=pltpu.PrefetchScalarGridSpec(
            num_scalar_prefetch=0,
            grid=(grid,),
            in_specs=[
                pl.BlockSpec((tile_rows, dim_p), lambda i: (i, 0)),
                pl.BlockSpec((1, dim_p), lambda i: (0, 0)),  # weight: resident
            ],
            out_specs=pl.BlockSpec((tile_rows, dim_p), lambda i: (i, 0)),
        ),
        compiler_params=pltpu.CompilerParams(
            dimension_semantics=("parallel",),
            vmem_limit_bytes=vmem_limit,
        ),
    )(x2d, w2d)

    if dim_p != dim:
        out2d = out2d[:, :dim]
    return out2d.reshape(orig_shape)


def rms_norm_ref(x, weight, eps=1e-6):
    xf = x.astype(jnp.float32)
    ms = jnp.mean(xf * xf, axis=-1, keepdims=True)
    normed = (xf * jax.lax.rsqrt(ms + eps)).astype(x.dtype)
    return (normed.astype(jnp.float32) * weight.astype(jnp.float32)).astype(x.dtype)


if __name__ == "__main__":
    key = jax.random.PRNGKey(0)
    k0, k1, k2, k3 = jax.random.split(key, 4)
    eps = 1e-6

    # 1) Lane-dense case (dim multiple of 128), typical layout.
    batch, seq, hidden = 2, 8, 256
    x = jax.random.normal(k0, (batch, seq, hidden), dtype=jnp.float32)
    w = 1.0 + 0.1 * jax.random.normal(k1, (hidden,), dtype=jnp.float32)
    out = jax.block_until_ready(rms_norm(x, w, eps))
    ref = rms_norm_ref(x, w, eps)
    assert out.shape == x.shape and out.dtype == x.dtype
    assert jnp.allclose(out, ref, atol=1e-5, rtol=1e-5), "mismatch (dense dim)"

    # 2) Narrow dim (hidden=32) -> feature axis padded to 128 lanes internally.
    hidden2 = 32
    x2 = jax.random.normal(k2, (batch, seq, hidden2), dtype=jnp.float32)
    w2 = jnp.ones((hidden2,), dtype=jnp.float32)
    out2 = jax.block_until_ready(rms_norm(x2, w2, eps))
    ref2 = rms_norm_ref(x2, w2, eps)
    assert out2.shape == x2.shape and out2.dtype == x2.dtype
    assert jnp.allclose(out2, ref2, atol=1e-5, rtol=1e-5), "mismatch (narrow dim)"

    # 3) Ragged rows: rows not a multiple of tile_rows (exercises the masked
    #    partial trailing block instead of a jnp.pad copy).
    x3 = jax.random.normal(k3, (20, 256), dtype=jnp.float32)
    w3 = 1.0 + 0.05 * jax.random.normal(k1, (256,), dtype=jnp.float32)
    out3 = jax.block_until_ready(rms_norm(x3, w3, eps, tile_rows=16))
    ref3 = rms_norm_ref(x3, w3, eps)
    assert out3.shape == x3.shape and out3.dtype == x3.dtype
    assert jnp.allclose(out3, ref3, atol=1e-5, rtol=1e-5), "mismatch (ragged rows)"

    print("KERNEL_OK")
</pallas_src>

<mosaic_0001>
module attributes {stable_mosaic.version = 11 : i64} {
  func.func @_rmsnorm_kernel(%arg0: i32, %arg1: memref<16x256xf32, #tpu.memory_space<vmem>>, %arg2: memref<1x256xf32, #tpu.memory_space<vmem>>, %arg3: memref<16x256xf32, #tpu.memory_space<vmem>>) attributes {dimension_semantics = [#tpu.dimension_semantics<parallel>], iteration_bounds = array<i64: 1>, scalar_prefetch = 0 : i64, scratch_operands = 0 : i64, tpu.core_type = #tpu.core_type<tc>, window_params = [{transform_indices = @transform_0, window_bounds = array<i64: 16, 256>}, {pipeline_mode = #tpu.pipeline_mode<synchronous>, transform_indices = @transform_1, window_bounds = array<i64: 1, 256>}, {transform_indices = @transform_2, window_bounds = array<i64: 16, 256>}]} {
    %c0 = arith.constant 0 : index
    %c0_0 = arith.constant 0 : index
    %0 = vector.load %arg1[%c0, %c0_0] : memref<16x256xf32, #tpu.memory_space<vmem>>, vector<16x256xf32>
    %1 = arith.mulf %0, %0 : vector<16x256xf32>
    %cst = arith.constant dense<0.000000e+00> : vector<16xf32>
    %2 = vector.multi_reduction <add>, %1, %cst [1] : vector<16x256xf32> to vector<16xf32>
    %3 = vector.shape_cast %2 : vector<16xf32> to vector<16x1xf32>
    %cst_1 = arith.constant 3.906250e-03 : f32
    %4 = vector.broadcast %cst_1 : f32 to vector<16x1xf32>
    %5 = arith.mulf %3, %4 : vector<16x1xf32>
    %cst_2 = arith.constant 9.99999997E-7 : f32
    %6 = vector.broadcast %cst_2 : f32 to vector<16x1xf32>
    %7 = arith.addf %5, %6 : vector<16x1xf32>
    %8 = math.rsqrt %7 : vector<16x1xf32>
    %9 = vector.broadcast %8 : vector<16x1xf32> to vector<16x256xf32>
    %10 = arith.mulf %0, %9 : vector<16x256xf32>
    %c0_3 = arith.constant 0 : index
    %c0_4 = arith.constant 0 : index
    %11 = vector.load %arg2[%c0_3, %c0_4] : memref<1x256xf32, #tpu.memory_space<vmem>>, vector<1x256xf32>
    %12 = vector.broadcast %11 : vector<1x256xf32> to vector<16x256xf32>
    %13 = arith.mulf %10, %12 : vector<16x256xf32>
    %c0_5 = arith.constant 0 : index
    %c0_6 = arith.constant 0 : index
    %14 = vector.load %arg3[%c0_5, %c0_6] : memref<16x256xf32, #tpu.memory_space<vmem>>, vector<16x256xf32>
    tpu.vector_store %arg3[%c0_5, %c0_6], %13 {strides = array<i32>} : memref<16x256xf32, #tpu.memory_space<vmem>>, vector<16x256xf32>,
    return
  }
  func.func @transform_0(%arg0: i32) -> (i32, i32) {
    %c0_i32 = arith.constant 0 : i32
    %c0_i32_0 = arith.constant 0 : i32
    return %arg0, %c0_i32 : i32, i32
  }
  func.func @transform_1(%arg0: i32) -> (i32, i32) {
    %c0_i32 = arith.constant 0 : i32
    %c0_i32_0 = arith.constant 0 : i32
    %c0_i32_1 = arith.constant 0 : i32
    return %c0_i32, %c0_i32_0 : i32, i32
  }
  func.func @transform_2(%arg0: i32) -> (i32, i32) {
    %c0_i32 = arith.constant 0 : i32
    %c0_i32_0 = arith.constant 0 : i32
    return %arg0, %c0_i32 : i32, i32
  }
}

</mosaic_0001>

<bundles_post_ra>
// kernel: tpu_custom_call.1
= control target key start
LH: loop header
LB: loop body
LE: loop exit
PB: predicated region body
PF: predicated region fallthrough
CT: control target
= control target key end

     0   :  { %7 = vsyncpa [#allocation3], 0  ;;  %s210_s0 = inlined_call_operand.hbm [shape: f32[16,256], index: 0, kind: input, shape index: {}]   ;;  %s211_s1 = inlined_call_operand.hbm [shape: f32[1,256], index: 1, kind: input, shape index: {}]   ;;  %s212_s2 = inlined_call_operand.hbm [shape: f32[16,256], index: 2, kind: output, shape index: {}]  }
   0x1   :  { %8 = vsyncpa [#allocation6], 0 }
   0x2   :  { %9 = vsyncpa [#allocation4], 0  ;;  %s175_s9 = smov [#allocation2]  }
   0x3   :  { %s15_s10 = sshll.u32 %s175_s9, 4  ;;  %s16_s10 = int_to_ptr.vmem [resolvable:$true] %s15_s10 }
   0x4   :  { %s117_s11 = scalar_lea.vmem %s16_s10, 512  ;;  %p122_p1 = scmp.lt.s32.totalorder %s16_s10, %s16_s10 }
   0x5   :  { %p118_p0 = scmp.ne.s32.totalorder %s16_s10, %s117_s11  ;;  %p123_p2 = scmp.lt.s32.totalorder %s117_s11, %s117_s11 }
   0x7   :  { %p124_p3 = por %p123_p2, %p122_p1 }
   0x9   :  { %p125_p4 = pnand %p124_p3, %p118_p0 }
   0xb   :  { %128 = shalt.err (!%p125_p4)
}
   0xc   :  { %s176_s12 = smov 256   ;;  %s177_s13 = smov 16  }
   0xd   :  { %21 = dma.hbm_to_vmem [thread:$0]  %s210_s0, 512, %s16_s10, [#allocation3], %s176_s12, %s176_s12, %s177_s13  }
   0xe   :  { %s178_s16 = smov [#allocation5]  }
   0xf   :  { %s28_s17 = sshll.u32 %s178_s16, 4  ;;  %s29_s17 = int_to_ptr.vmem [resolvable:$true] %s28_s17 }
  0x10   :  { %s137_s18 = scalar_lea.vmem %s29_s17, 32  ;;  %p142_p6 = scmp.lt.s32.totalorder %s29_s17, %s29_s17 }
  0x11   :  { %p138_p5 = scmp.ne.s32.totalorder %s29_s17, %s137_s18  ;;  %p143_p7 = scmp.lt.s32.totalorder %s137_s18, %s137_s18 }
  0x13   :  { %p144_p8 = por %p143_p7, %p142_p6 }
  0x15   :  { %p145_p9 = pnand %p144_p8, %p138_p5 }
  0x17   :  { %148 = shalt.err (!%p145_p9)
}
  0x18   :  { %31 = dma.hbm_to_vmem [thread:$0]  %s211_s1, 32, %s29_s17, [#allocation6]  }
  0x19   :  { %169 = dma.done.wait [#allocation3], 512  }
  0x1a   :  { %170 = vsyncadd [#allocation3], 4294966784 }
  0x1b   :  { %171 = dma.done.wait [#allocation6], 32  }
  0x1c   :  { %172 = vsyncadd [#allocation6], 4294967264  ;;  %v38_v0 = vld [vmem:[#allocation2] sm:$0xff]  ;;  %v39_v1 = vld [vmem:[#allocation2 + $0x8] sm:$0xff]  ;;  %v64_v15 = vlaneseq  ;;  %s179_s0 = smov [#allocation7]  }
  0x1d   :  { %v40_v2 = vld [vmem:[#allocation2 + $0x10] sm:$0xff]  ;;  %v42_v3 = vmul.f32 %v38_v0, %v38_v0  ;;  %v43_v4 = vmul.f32 %v39_v1, %v39_v1  ;;  %v41_v5 = vld [vmem:[#allocation2 + $0x18] sm:$0xff]  ;;  %v62_v20 = vld [vmem:[#allocation5] sm:$0x3]  ;;  %s87_s1 = sshll.u32 %s179_s0, 4  ;;  %s88_s1 = int_to_ptr.vmem [resolvable:$true] %s87_s1 }
  0x1e   :  { %v44_v6 = vmul.f32 %v40_v2, %v40_v2  ;;  %v45_v7 = vmul.f32 %v41_v5, %v41_v5  ;;  %v65_v17 = vshrl.u32 %v64_v15, 7  ;;  %s149_s21 = scalar_lea.vmem %s88_s1, 512  ;;  %p154_p11 = scmp.lt.s32.totalorder %s88_s1, %s88_s1 }
  0x1f   :  { %v46_v8 = vadd.f32 %v43_v4, %v42_v3  ;;  %p150_p10 = scmp.ne.s32.totalorder %s88_s1, %s149_s21  ;;  %p155_p12 = scmp.lt.s32.totalorder %s149_s21, %s149_s21 }
  0x20   :  { %v49_v9 = vadd.f32 %v45_v7, %v44_v6  ;;  %v66_v18 = vsub.s32 0, %v65_v17  ;;  %v70_v19 = vsub.s32 1, %v65_v17 }
  0x21   :  { %47 = vadd.xlane.f32.xlu0 %v46_v8  ;;  %p156_p13 = por %p155_p12, %p154_p11 }
  0x22   :  { %v67_v21 = vrot.slane %v62_v20, %v66_v18  ;;  %v71_v22 = vrot.slane %v62_v20, %v70_v19 }
  0x23   :  { %p157_p0 = pnand %p156_p13, %p150_p10 }
  0x25   :  { %50 = vadd.xlane.f32.xlu0 %v49_v9 }
  0xaa   :  { %v48_v10 = vpop.xlane.xlu0 %47 }
  0xab   :  { %v52_v11 = vmul.f32 0.00390625, %v48_v10 }
  0xad   :  { %v54_v12 = vadd.f32 1e-06, %v52_v11 }
  0xae   :  { %v51_v13 = vpop.xlane.xlu0 %50 }
  0xaf   :  { %105 = vrsqrt.f32 %v54_v12  ;;  %v53_v14 = vmul.f32 0.00390625, %v51_v13 }
  0xb1   :  { %v55_v16 = vadd.f32 1e-06, %v53_v14 }
  0xb3   :  { %107 = vrsqrt.f32 %v55_v16 }
  0xbc   :  { %v106_v23 = vpop.eup %105 }
  0xbd   :  { %v58_v24 = vmul.f32 %v106_v23, %v38_v0  ;;  %v59_v25 = vmul.f32 %v106_v23, %v39_v1 }
  0xbf   :  { %v74_v26 = vmul.f32 %v67_v21, %v58_v24  ;;  %v75_v27 = vmul.f32 %v71_v22, %v59_v25 }
  0xc0   :  { %v108_v28 = vpop.eup %107 }
  0xc1   :  { %v60_v29 = vmul.f32 %v108_v28, %v40_v2  ;;  %v61_v30 = vmul.f32 %v108_v28, %v41_v5  ;;  %78 = vst [vmem:[#allocation7] sm:$0xff] %v74_v26  ;;  %79 = vst [vmem:[#allocation7 + $0x8] sm:$0xff] %v75_v27 }
  0xc3   :  { %v76_v31 = vmul.f32 %v67_v21, %v60_v29  ;;  %v77_v32 = vmul.f32 %v71_v22, %v61_v30 }
  0xc5   :  { %80 = vst [vmem:[#allocation7 + $0x10] sm:$0xff] %v76_v31  ;;  %81 = vst [vmem:[#allocation7 + $0x18] sm:$0xff] %v77_v32 }
  0xc6   :  { %160 = shalt.err (!%p157_p0)
}
  0xc7   :  { %93 = dma.vmem_to_hbm [thread:$0]  %s88_s1, 512, %s212_s2, [#allocation4], %s176_s12, %s176_s12, %s177_s13  }
  0xc8   :  { %173 = dma.done.wait [#allocation4], 512  }
  0xc9   :  { %174 = vsyncadd [#allocation4], 4294966784 }
  0xca   :  { %97 = vsyncpa [#allocation3], 1 }
  0xcb   :  { %98 = vsyncpa [#allocation6], 1 }
  0xcc   :  { %99 = vsyncpa [#allocation4], 1 }

</bundles_post_ra>
